<compile_context>
chip_gen: v7x
topology: tpu7x:2x2x1
jax: 0.10.0
libtpu: 0.0.40
codegen_flags: <defaults>
</compile_context>

<pallas_src>
import math
import functools

import jax
import jax.numpy as jnp
import numpy as np
from jax import lax
from jax.experimental import pallas as pl
from jax.experimental.pallas import tpu as pltpu

MASK_VALUE = -100000000.0


# ----------------------------------------------------------------------------
# helpers
# ----------------------------------------------------------------------------
def _pick_tile(dim, candidates):
    """Largest candidate tile that evenly divides `dim`, else the full dim."""
    for c in candidates:
        if dim % c == 0:
            return c
    return dim


# ----------------------------------------------------------------------------
# Pallas kernels
# ----------------------------------------------------------------------------
def linear_kernel(x_ref, w_ref, b_ref, o_ref, acc_ref):
    # x: (tm, tk), w: (tn, tk)  (nn.Linear layout — no HBM transpose),
    # b: (1, tn) -> o: (tm, tn); acc: f32 VMEM scratch.
    @pl.when(pl.program_id(2) == 0)
    def _init():
        acc_ref[...] = jnp.zeros_like(acc_ref)

    x = x_ref[...].astype(jnp.bfloat16)          # bf16 into the MXU
    w = w_ref[...].astype(jnp.bfloat16)
    acc_ref[...] += lax.dot_general(x, w, (((1,), (1,)), ((), ())),
                                    preferred_element_type=jnp.float32)

    @pl.when(pl.program_id(2) == pl.num_programs(2) - 1)
    def _store():
        o_ref[...] = (acc_ref[...] +
                      b_ref[...].astype(jnp.float32)).astype(o_ref.dtype)


def gqa_flash_kernel(*refs, scale, has_kp, has_am):
    # refs: [kp (1,tkv)], q (tq,D), k (tkv,D), v (tkv,D), [am (tq,tkv)],
    #       o (tq,D), m (tq,1), l (tq,1), acc (tq,D)
    i = 0
    kp_ref = None
    if has_kp:
        kp_ref = refs[i]; i += 1
    q_ref, k_ref, v_ref = refs[i], refs[i + 1], refs[i + 2]; i += 3
    am_ref = None
    if has_am:
        am_ref = refs[i]; i += 1
    o_ref = refs[i]
    m_sc, l_sc, acc_sc = refs[i + 1], refs[i + 2], refs[i + 3]

    kv = pl.program_id(2)

    @pl.when(kv == 0)
    def _init():
        m_sc[...] = jnp.full_like(m_sc, -1e30)
        l_sc[...] = jnp.zeros_like(l_sc)
        acc_sc[...] = jnp.zeros_like(acc_sc)

    # bf16 operands into the MXU (1/sqrt(D) folded into q), f32 scores.
    q = (q_ref[...].astype(jnp.float32) * scale).astype(jnp.bfloat16)
    k = k_ref[...].astype(jnp.bfloat16)
    s = lax.dot_general(q, k, (((1,), (1,)), ((), ())),
                        preferred_element_type=jnp.float32)      # (tq, tkv)
    if has_kp:
        s = s + kp_ref[...].astype(jnp.float32)                  # (1, tkv)
    if has_am:
        s = s + am_ref[...].astype(jnp.float32)                  # (tq, tkv)

    m_prev = m_sc[...]
    m_new = jnp.maximum(m_prev, jnp.max(s, axis=-1, keepdims=True))
    alpha = jnp.exp(m_prev - m_new)
    p = jnp.exp(s - m_new)
    l_sc[...] = alpha * l_sc[...] + jnp.sum(p, axis=-1, keepdims=True)
    acc_sc[...] = alpha * acc_sc[...] + jnp.dot(
        p.astype(jnp.bfloat16), v_ref[...].astype(jnp.bfloat16),
        preferred_element_type=jnp.float32)
    m_sc[...] = m_new

    @pl.when(kv == pl.num_programs(2) - 1)
    def _fin():
        inv = pl.reciprocal(l_sc[...], approx=True)
        o_ref[...] = (acc_sc[...] * inv).astype(o_ref.dtype)


def gqa_weights_kernel(*refs, scale, has_kp, has_am):
    # refs: [kp (1,S)], q (tq,D), k (S,D), v (S,D), [am (tq,S)], o (tq,D), a (tq,S)
    i = 0
    kp_ref = None
    if has_kp:
        kp_ref = refs[i]; i += 1
    q_ref, k_ref, v_ref = refs[i], refs[i + 1], refs[i + 2]; i += 3
    am_ref = None
    if has_am:
        am_ref = refs[i]; i += 1
    o_ref, a_ref = refs[i], refs[i + 1]

    q = (q_ref[...].astype(jnp.float32) * scale).astype(jnp.bfloat16)
    k = k_ref[...].astype(jnp.bfloat16)
    s = lax.dot_general(q, k, (((1,), (1,)), ((), ())),
                        preferred_element_type=jnp.float32)      # (tq, S)
    if has_kp:
        s = s + kp_ref[...].astype(jnp.float32)
    if has_am:
        s = s + am_ref[...].astype(jnp.float32)

    m = jnp.max(s, axis=-1, keepdims=True)
    e = jnp.exp(s - m)
    inv = pl.reciprocal(jnp.sum(e, axis=-1, keepdims=True), approx=True)
    p = e * inv
    a_ref[...] = p.astype(a_ref.dtype)                           # bf16 weights
    o_ref[...] = jnp.dot(p.astype(jnp.bfloat16), v_ref[...].astype(jnp.bfloat16),
                         preferred_element_type=jnp.float32).astype(o_ref.dtype)


# ----------------------------------------------------------------------------
# Pallas wrappers
# ----------------------------------------------------------------------------
def pallas_linear(x2d, weight, bias, out_dtype=None):
    """y = x @ weight.T + bias (weight: (out, in) like nn.Linear, no transpose)."""
    M, K = x2d.shape
    N = weight.shape[0]
    if out_dtype is None:
        out_dtype = x2d.dtype
    b2 = bias.reshape(1, N)

    tm = _pick_tile(M, (512, 256, 128, 64, 32, 16, 8))
    tn = _pick_tile(N, (512, 256, 128))
    tk = _pick_tile(K, (512, 256, 128))
    grid = (M // tm, N // tn, K // tk)

    bpe_x = x2d.dtype.itemsize
    bpe_w = weight.dtype.itemsize
    bpe_o = np.dtype(out_dtype).itemsize
    cost = pl.CostEstimate(flops=int(2 * M * K * N), transcendentals=0,
                           bytes_accessed=int(M * K * bpe_x + N * K * bpe_w
                                              + M * N * bpe_o))

    est = 2 * (tm * tk * bpe_x + tn * tk * bpe_w + tn * 4 + tm * tn * bpe_o) \
          + tm * tn * 4
    vmem_limit = int(min(max(4 * est, 32 << 20), 100 << 20))

    return pl.pallas_call(
        linear_kernel,
        out_shape=jax.ShapeDtypeStruct((M, N), out_dtype),
        grid=grid,
        in_specs=[pl.BlockSpec((tm, tk), lambda i, j, k: (i, k)),
                  pl.BlockSpec((tn, tk), lambda i, j, k: (j, k)),
                  pl.BlockSpec((1, tn), lambda i, j, k: (0, j))],
        out_specs=pl.BlockSpec((tm, tn), lambda i, j, k: (i, j)),
        scratch_shapes=[pltpu.VMEM((tm, tn), jnp.float32)],
        compiler_params=pltpu.CompilerParams(
            dimension_semantics=("parallel", "parallel", "arbitrary"),
            vmem_limit_bytes=vmem_limit),
        cost_estimate=cost,
    )(x2d, weight, b2)


def pallas_gqa_attention(Qg, Kg, Vg, kp_bias, attn_bias, ngroup,
                         return_attention=False):
    """Qg: (B*G, GH*S, D), Kg/Vg: (B*G, S, D).
    kp_bias: (B,1,S) f32 or None. attn_bias: (B,1,S,S) f32 or None."""
    BG, M, D = Qg.shape
    S = Kg.shape[1]
    G = ngroup
    B = BG // G
    scale = 1.0 / math.sqrt(D)
    has_kp = kp_bias is not None
    has_am = attn_bias is not None
    itemsize = Qg.dtype.itemsize

    # tq divides S (a q tile never straddles two heads, keeping the
    # head-broadcast mask index_map valid); capped at 256 for v5e/v7x VMEM.
    tq = _pick_tile(S, (256, 128, 64, 32, 16, 8))
    nqs = S // tq
    nq = M // tq

    flops = int(4 * BG * M * S * D)
    transcend = int(BG * M * S)
    bytes_acc = int(2 * BG * M * D * itemsize + 2 * BG * S * D * itemsize
                    + (B * S * 4 if has_kp else 0)
                    + (B * S * S * 4 if has_am else 0))

    if not return_attention:
        # ---- flash path: KV-tiled online softmax, no (B,H,S,S) stream ----
        tkv = _pick_tile(S, (512, 256, 128))
        nkv = S // tkv

        in_specs, inputs = [], []
        if has_kp:
            in_specs.append(pl.BlockSpec((None, 1, tkv),
                                         lambda bg, qi, ki: (bg // G, 0, ki)))
            inputs.append(kp_bias)
        in_specs += [pl.BlockSpec((None, tq, D), lambda bg, qi, ki: (bg, qi, 0)),
                     pl.BlockSpec((None, tkv, D), lambda bg, qi, ki: (bg, ki, 0)),
                     pl.BlockSpec((None, tkv, D), lambda bg, qi, ki: (bg, ki, 0))]
        inputs += [Qg, Kg, Vg]
        if has_am:
            in_specs.append(pl.BlockSpec(
                (None, None, tq, tkv),
                lambda bg, qi, ki: (bg // G, 0, qi % nqs, ki)))
            inputs.append(attn_bias)

        blk = (2 * tq * D * itemsize + 2 * tkv * D * itemsize
               + (tkv * 4 if has_kp else 0) + (tq * tkv * 4 if has_am else 0))
        est = 2 * blk + tq * (D + 2) * 4 + 6 * tq * tkv * 4
        vmem_limit = int(min(max(2 * est, 32 << 20), 100 << 20))

        out = pl.pallas_call(
            functools.partial(gqa_flash_kernel, scale=scale,
                              has_kp=has_kp, has_am=has_am),
            out_shape=jax.ShapeDtypeStruct((BG, M, D), Qg.dtype),
            grid=(BG, nq, nkv),
            in_specs=in_specs,
            out_specs=pl.BlockSpec((None, tq, D), lambda bg, qi, ki: (bg, qi, 0)),
            scratch_shapes=[pltpu.VMEM((tq, 1), jnp.float32),
                            pltpu.VMEM((tq, 1), jnp.float32),
                            pltpu.VMEM((tq, D), jnp.float32)],
            compiler_params=pltpu.CompilerParams(
                dimension_semantics=("parallel", "parallel", "arbitrary"),
                vmem_limit_bytes=vmem_limit),
            cost_estimate=pl.CostEstimate(flops=flops, transcendentals=transcend,
                                          bytes_accessed=bytes_acc),
        )(*inputs)
        return out, None

    # ---- weights path: full-S K/V per step, emits bf16 attention weights ----
    in_specs, inputs = [], []
    if has_kp:
        in_specs.append(pl.BlockSpec((None, 1, S), lambda bg, qi: (bg // G, 0, 0)))
        inputs.append(kp_bias)
    in_specs += [pl.BlockSpec((None, tq, D), lambda bg, qi: (bg, qi, 0)),
                 pl.BlockSpec((None, S, D), lambda bg, qi: (bg, 0, 0)),
                 pl.BlockSpec((None, S, D), lambda bg, qi: (bg, 0, 0))]
    inputs += [Qg, Kg, Vg]
    if has_am:
        in_specs.append(pl.BlockSpec(
            (None, None, tq, S), lambda bg, qi: (bg // G, 0, qi % nqs, 0)))
        inputs.append(attn_bias)

    blk = (2 * tq * D * itemsize + 2 * S * D * itemsize + tq * S * 2
           + (S * 4 if has_kp else 0) + (tq * S * 4 if has_am else 0))
    est = 2 * blk + 6 * tq * S * 4
    vmem_limit = int(min(max(2 * est, 32 << 20), 100 << 20))

    out, attn = pl.pallas_call(
        functools.partial(gqa_weights_kernel, scale=scale,
                          has_kp=has_kp, has_am=has_am),
        out_shape=(jax.ShapeDtypeStruct((BG, M, D), Qg.dtype),
                   jax.ShapeDtypeStruct((BG, M, S), jnp.bfloat16)),
        grid=(BG, nq),
        in_specs=in_specs,
        out_specs=(pl.BlockSpec((None, tq, D), lambda bg, qi: (bg, qi, 0)),
                   pl.BlockSpec((None, tq, S), lambda bg, qi: (bg, qi, 0))),
        compiler_params=pltpu.CompilerParams(
            dimension_semantics=("parallel", "parallel"),
            vmem_limit_bytes=vmem_limit),
        cost_estimate=pl.CostEstimate(
            flops=flops, transcendentals=transcend,
            bytes_accessed=int(bytes_acc + BG * M * S * 2)),
    )(*inputs)
    return out, attn


# ----------------------------------------------------------------------------
# Module-equivalent forward (glue in plain JAX, compute in Pallas)
# ----------------------------------------------------------------------------
def grouped_query_attention_forward(params, query, key, value,
                                    attention_mask=None, key_padding_mask=None,
                                    *, nhead, ngroup, dropout_p=0.0,
                                    return_attention=True):
    B, S, E = query.shape
    D = E // nhead
    GH = nhead // ngroup
    G = ngroup

    # Projections emit bf16 activations (halves attention HBM/VMEM traffic);
    # f32 accumulation happens inside the kernel.
    Q2 = pallas_linear(query.reshape(B * S, E), params["w_q"], params["b_q"],
                       out_dtype=jnp.bfloat16)
    K2 = pallas_linear(key.reshape(B * S, E), params["w_k"], params["b_k"],
                       out_dtype=jnp.bfloat16)
    V2 = pallas_linear(value.reshape(B * S, E), params["w_v"], params["b_v"],
                       out_dtype=jnp.bfloat16)

    # Group-folded layouts: one grid step handles all GH heads of a KV group,
    # so K/V are fetched once per group and the QK^T M-dim is GH*S (tiled).
    # TODO(synk): fuse these bf16 layout transposes into the projection /
    # attention BlockSpec index_maps to avoid the extra HBM passes.
    Qg = Q2.reshape(B, S, G, GH, D).transpose(0, 2, 3, 1, 4).reshape(B * G, GH * S, D)
    Kg = K2.reshape(B, S, G, D).transpose(0, 2, 1, 3).reshape(B * G, S, D)
    Vg = V2.reshape(B, S, G, D).transpose(0, 2, 1, 3).reshape(B * G, S, D)

    # key-padding mask stays a tiny (B,1,S) additive f32 bias, only if present.
    if key_padding_mask is not None:
        kpm = key_padding_mask
        if kpm.dtype == jnp.bool_:
            kp_bias = jnp.where(kpm, jnp.float32(MASK_VALUE), jnp.float32(0.0))
        else:
            kp_bias = kpm.astype(jnp.float32)
        kp_bias = kp_bias.reshape(B, 1, S)
    else:
        kp_bias = None

    # attention_mask stays head-broadcast (B,1,S,S); never expanded to H heads.
    if attention_mask is not None:
        am = attention_mask
        if am.dtype == jnp.bool_:
            am = jnp.where(am, jnp.float32(MASK_VALUE), jnp.float32(0.0))
        am = am.astype(jnp.float32)
        while am.ndim < 4:
            am = am[None]
        # TODO(synk): per-head (B, nhead, S, S) masks would need a per-head
        # stream; only head-broadcast masks are fused into the kernel.
        assert am.shape[1] == 1, "per-head attention masks not supported"
        attn_bias = jnp.broadcast_to(am, (B, 1, S, S))
    else:
        attn_bias = None

    # TODO(synk): attention dropout (dropout_p > 0) not replicated (torch RNG).
    x_heads, attn = pallas_gqa_attention(Qg, Kg, Vg, kp_bias, attn_bias, G,
                                         return_attention=return_attention)

    x = (x_heads.reshape(B, G, GH, S, D)
                .transpose(0, 3, 1, 2, 4)
                .reshape(B * S, E))
    x = pallas_linear(x, params["w_o"], params["b_o"],
                      out_dtype=query.dtype).reshape(B, S, E)

    attention = (attn.reshape(B, nhead, S, S).astype(jnp.float32)
                 if return_attention else None)
    return x, attention


# ----------------------------------------------------------------------------
# Pure-JAX reference (mirrors the PyTorch forward) for verification
# ----------------------------------------------------------------------------
def reference_forward(params, query, key, value, attention_mask,
                      key_padding_mask, *, nhead, ngroup):
    B, S, E = query.shape
    D = E // nhead
    gh = nhead // ngroup
    lin = lambda x, w, b: x @ w.T + b
    Q = lin(query, params["w_q"], params["b_q"]).reshape(B, S, nhead, D).transpose(0, 2, 1, 3)
    K = lin(key, params["w_k"], params["b_k"]).reshape(B, S, ngroup, D).transpose(0, 2, 1, 3)
    V = lin(value, params["w_v"], params["b_v"]).reshape(B, S, ngroup, D).transpose(0, 2, 1, 3)
    K = jnp.repeat(K, gh, axis=1)
    V = jnp.repeat(V, gh, axis=1)
    score = jnp.einsum("bhqd,bhkd->bhqk", Q, K) / math.sqrt(D)
    if attention_mask is not None:
        am = attention_mask
        if am.dtype == jnp.bool_:
            am = jnp.where(am, MASK_VALUE, 0.0)
        score = score + am
    if key_padding_mask is not None:
        m = jnp.where(key_padding_mask.reshape(B, 1, 1, S), MASK_VALUE, 0.0)
        score = score + m
    attn = jax.nn.softmax(score, axis=-1)
    x = jnp.einsum("bhqk,bhkd->bhqd", attn, V).transpose(0, 2, 1, 3).reshape(B, S, E)
    x = lin(x, params["w_o"], params["b_o"])
    return x, attn


# ----------------------------------------------------------------------------
# Main
# ----------------------------------------------------------------------------
if __name__ == "__main__":
    embed_size, nhead, ngroup, dropout_p = 32, 4, 2, 0.0
    head_dim = embed_size // nhead
    B, S = 2, 8

    key0 = jax.random.PRNGKey(0)
    ks = jax.random.split(key0, 12)

    def init_linear(kw, kb, out_dim, in_dim):
        bound = 1.0 / math.sqrt(in_dim)
        w = jax.random.uniform(kw, (out_dim, in_dim), jnp.float32, -bound, bound)
        b = jax.random.uniform(kb, (out_dim,), jnp.float32, -bound, bound)
        return w, b

    w_q, b_q = init_linear(ks[0], ks[1], embed_size, embed_size)
    w_k, b_k = init_linear(ks[2], ks[3], ngroup * head_dim, embed_size)
    w_v, b_v = init_linear(ks[4], ks[5], ngroup * head_dim, embed_size)
    w_o, b_o = init_linear(ks[6], ks[7], embed_size, embed_size)
    params = dict(w_q=w_q, b_q=b_q, w_k=w_k, b_k=b_k,
                  w_v=w_v, b_v=b_v, w_o=w_o, b_o=b_o)

    query = jax.random.normal(ks[8], (B, S, embed_size), jnp.float32)
    key = jax.random.normal(ks[9], (B, S, embed_size), jnp.float32)
    value = jax.random.normal(ks[10], (B, S, embed_size), jnp.float32)
    # bool key padding mask: mask out the last 2 keys of batch element 1
    key_padding_mask = jnp.zeros((B, S), jnp.bool_).at[1, -2:].set(True)

    # Path 1: module-equivalent call (returns attention weights).
    x, attn = grouped_query_attention_forward(
        params, query, key, value,
        attention_mask=None, key_padding_mask=key_padding_mask,
        nhead=nhead, ngroup=ngroup, dropout_p=dropout_p, return_attention=True)
    x = jax.block_until_ready(x)
    attn = jax.block_until_ready(attn)

    x_ref, attn_ref = reference_forward(
        params, query, key, value, None, key_padding_mask,
        nhead=nhead, ngroup=ngroup)
    assert x.shape == (B, S, embed_size) and attn.shape == (B, nhead, S, S)
    np.testing.assert_allclose(np.asarray(x), np.asarray(x_ref),
                               rtol=3e-2, atol=3e-2)
    np.testing.assert_allclose(np.asarray(attn), np.asarray(attn_ref), atol=3e-2)

    # Path 2: flash (KV-tiled online-softmax) path, no attention-weights
    # stream, with a head-broadcast additive attention mask (causal).
    causal = jnp.triu(jnp.ones((S, S), jnp.bool_), k=1).reshape(1, 1, S, S)
    x2, attn2 = grouped_query_attention_forward(
        params, query, key, value,
        attention_mask=causal, key_padding_mask=key_padding_mask,
        nhead=nhead, ngroup=ngroup, dropout_p=dropout_p, return_attention=False)
    x2 = jax.block_until_ready(x2)
    assert attn2 is None
    x2_ref, _ = reference_forward(
        params, query, key, value, causal, key_padding_mask,
        nhead=nhead, ngroup=ngroup)
    np.testing.assert_allclose(np.asarray(x2), np.asarray(x2_ref),
                               rtol=3e-2, atol=3e-2)

    print("KERNEL_OK")
</pallas_src>

<mosaic_0001>
module attributes {stable_mosaic.version = 11 : i64} {
  func.func @linear_kernel(%arg0: i32, %arg1: i32, %arg2: i32, %arg3: memref<16x32xf32, #tpu.memory_space<vmem>>, %arg4: memref<32x32xf32, #tpu.memory_space<vmem>>, %arg5: memref<1x32xf32, #tpu.memory_space<vmem>>, %arg6: memref<16x32xbf16, #tpu.memory_space<vmem>>, %arg7: memref<16x32xf32, #tpu.memory_space<vmem>>) attributes {dimension_semantics = [#tpu.dimension_semantics<parallel>, #tpu.dimension_semantics<parallel>, #tpu.dimension_semantics<arbitrary>], iteration_bounds = array<i64: 1, 1, 1>, scalar_prefetch = 0 : i64, scratch_operands = 1 : i64, tpu.core_type = #tpu.core_type<tc>, window_params = [{transform_indices = @transform_0, window_bounds = array<i64: 16, 32>}, {transform_indices = @transform_1, window_bounds = array<i64: 32, 32>}, {transform_indices = @transform_2, window_bounds = array<i64: 1, 32>}, {transform_indices = @transform_3, window_bounds = array<i64: 16, 32>}]} {
    %c0_i32 = arith.constant 0 : i32
    %0 = arith.cmpi eq, %arg2, %c0_i32 : i32
    %1 = arith.extui %0 : i1 to i32
    %c0_i32_0 = arith.constant 0 : i32
    %2 = arith.cmpi ne, %1, %c0_i32_0 : i32
    scf.if %2 {
      %cst_10 = arith.constant 0.000000e+00 : f32
      %14 = vector.broadcast %cst_10 : f32 to vector<16x32xf32>
      %c0_11 = arith.constant 0 : index
      %c0_12 = arith.constant 0 : index
      %15 = vector.load %arg7[%c0_11, %c0_12] : memref<16x32xf32, #tpu.memory_space<vmem>>, vector<16x32xf32>
      tpu.vector_store %arg7[%c0_11, %c0_12], %14 {strides = array<i32>} : memref<16x32xf32, #tpu.memory_space<vmem>>, vector<16x32xf32>,
    } else {
    }
    %c0 = arith.constant 0 : index
    %c0_1 = arith.constant 0 : index
    %3 = vector.load %arg3[%c0, %c0_1] : memref<16x32xf32, #tpu.memory_space<vmem>>, vector<16x32xf32>
    %4 = arith.truncf %3 : vector<16x32xf32> to vector<16x32xbf16>
    %c0_2 = arith.constant 0 : index
    %c0_3 = arith.constant 0 : index
    %5 = vector.load %arg4[%c0_2, %c0_3] : memref<32x32xf32, #tpu.memory_space<vmem>>, vector<32x32xf32>
    %6 = arith.truncf %5 : vector<32x32xf32> to vector<32x32xbf16>
    %c0_4 = arith.constant 0 : index
    %c0_5 = arith.constant 0 : index
    %7 = vector.load %arg7[%c0_4, %c0_5] : memref<16x32xf32, #tpu.memory_space<vmem>>, vector<16x32xf32>
    %cst = arith.constant dense<0.000000e+00> : vector<16x32xf32>
    %8 = tpu.matmul %4, %6, %cst {dimension_numbers = #tpu.dot_dimension_numbers<[1], [1], [0], [0], [0, 0, 1, 0], [], []>} : vector<16x32xbf16>, vector<32x32xbf16>, vector<16x32xf32> -> vector<16x32xf32>
    %9 = arith.addf %7, %8 : vector<16x32xf32>
    %c0_6 = arith.constant 0 : index
    %c0_7 = arith.constant 0 : index
    %10 = vector.load %arg7[%c0_6, %c0_7] : memref<16x32xf32, #tpu.memory_space<vmem>>, vector<16x32xf32>
    tpu.vector_store %arg7[%c0_6, %c0_7], %9 {strides = array<i32>} : memref<16x32xf32, #tpu.memory_space<vmem>>, vector<16x32xf32>,
    %c0_i32_8 = arith.constant 0 : i32
    %11 = arith.cmpi eq, %arg2, %c0_i32_8 : i32
    %12 = arith.extui %11 : i1 to i32
    %c0_i32_9 = arith.constant 0 : i32
    %13 = arith.cmpi ne, %12, %c0_i32_9 : i32
    scf.if %13 {
      %c0_10 = arith.constant 0 : index
      %c0_11 = arith.constant 0 : index
      %14 = vector.load %arg7[%c0_10, %c0_11] : memref<16x32xf32, #tpu.memory_space<vmem>>, vector<16x32xf32>
      %c0_12 = arith.constant 0 : index
      %c0_13 = arith.constant 0 : index
      %15 = vector.load %arg5[%c0_12, %c0_13] : memref<1x32xf32, #tpu.memory_space<vmem>>, vector<1x32xf32>
      %16 = vector.broadcast %15 : vector<1x32xf32> to vector<16x32xf32>
      %17 = arith.addf %14, %16 : vector<16x32xf32>
      %18 = arith.truncf %17 : vector<16x32xf32> to vector<16x32xbf16>
      %c0_14 = arith.constant 0 : index
      %c0_15 = arith.constant 0 : index
      %19 = vector.load %arg6[%c0_14, %c0_15] : memref<16x32xbf16, #tpu.memory_space<vmem>>, vector<16x32xbf16>
      tpu.vector_store %arg6[%c0_14, %c0_15], %18 {strides = array<i32>} : memref<16x32xbf16, #tpu.memory_space<vmem>>, vector<16x32xbf16>,
    } else {
    }
    return
  }
  func.func @transform_0(%arg0: i32, %arg1: i32, %arg2: i32) -> (i32, i32) {
    %c0_i32 = arith.constant 0 : i32
    return %arg0, %arg2 : i32, i32
  }
  func.func @transform_1(%arg0: i32, %arg1: i32, %arg2: i32) -> (i32, i32) {
    %c0_i32 = arith.constant 0 : i32
    return %arg1, %arg2 : i32, i32
  }
  func.func @transform_2(%arg0: i32, %arg1: i32, %arg2: i32) -> (i32, i32) {
    %c0_i32 = arith.constant 0 : i32
    %c0_i32_0 = arith.constant 0 : i32
    return %c0_i32, %arg1 : i32, i32
  }
  func.func @transform_3(%arg0: i32, %arg1: i32, %arg2: i32) -> (i32, i32) {
    %c0_i32 = arith.constant 0 : i32
    return %arg0, %arg1 : i32, i32
  }
}

</mosaic_0001>

<bundles_post_ra>
// kernel: tpu_custom_call.1
= control target key start
LH: loop header
LB: loop body
LE: loop exit
PB: predicated region body
PF: predicated region fallthrough
CT: control target
= control target key end

     0   :  { %8 = vsyncpa [#allocation4], 0  ;;  %s333_s0 = inlined_call_operand.hbm [shape: f32[16,32], index: 0, kind: input, shape index: {}]   ;;  %s334_s1 = inlined_call_operand.hbm [shape: f32[32,32], index: 1, kind: input, shape index: {}]   ;;  %s335_s2 = inlined_call_operand.vmem [shape: f32[1,32], index: 2, kind: input, shape index: {}]   ;;  %s336_s3 = inlined_call_operand.hbm [shape: bf16[16,32], index: 3, kind: output, shape index: {}]  }
   0x1   :  { %9 = vsyncpa [#allocation7], 0 }
   0x2   :  { %10 = vsyncpa [#allocation5], 0  ;;  %s258_s12 = smov [#allocation3]   ;;  %s186_s16 = scalar_lea.hbm %s333_s0, 256 }
   0x3   :  { %s16_s13 = sshll.u32 %s258_s12, 4  ;;  %p187_p0 = scmp.ne.s32.totalorder %s333_s0, %s186_s16  ;;  %s17_s13 = int_to_ptr.vmem [resolvable:$true] %s16_s13 }
   0x4   :  { %p190_p1 = scmp.lt.u32.totalorder %s186_s16, %s333_s0 }
   0x6   :  { %p192_p2 = pnand %p190_p1, %p187_p0 }
   0x8   :  { %195 = shalt.err (!%p192_p2)
}
   0x9   :  { %s196_s21 = scalar_lea.vmem %s17_s13, 256  ;;  %p201_p4 = scmp.lt.s32.totalorder %s17_s13, %s17_s13 }
   0xa   :  { %p197_p3 = scmp.ne.s32.totalorder %s17_s13, %s196_s21  ;;  %p202_p5 = scmp.lt.s32.totalorder %s196_s21, %s196_s21 }
   0xc   :  { %p203_p6 = por %p202_p5, %p201_p4 }
   0xe   :  { %p204_p7 = pnand %p203_p6, %p197_p3 }
  0x10   :  { %207 = shalt.err (!%p204_p7)
}
  0x11   :  { %s259_s22 = smov 128   ;;  %s260_s23 = smov 8  }
  0x12   :  { %22 = dma.hbm_to_vmem [thread:$0]  %s333_s0, 256, %s17_s13, [#allocation4], %s259_s22, %s259_s22, %s260_s23  }
  0x13   :  { %s261_s26 = smov [#allocation6]   ;;  %s208_s30 = scalar_lea.hbm %s334_s1, 512 }
  0x14   :  { %s28_s27 = sshll.u32 %s261_s26, 4  ;;  %p209_p8 = scmp.ne.s32.totalorder %s334_s1, %s208_s30  ;;  %s29_s27 = int_to_ptr.vmem [resolvable:$true] %s28_s27 }
  0x15   :  { %p212_p9 = scmp.lt.u32.totalorder %s208_s30, %s334_s1 }
  0x17   :  { %p214_p10 = pnand %p212_p9, %p209_p8 }
  0x19   :  { %217 = shalt.err (!%p214_p10)
}
  0x1a   :  { %s218_s8 = scalar_lea.vmem %s29_s27, 512  ;;  %p223_p12 = scmp.lt.s32.totalorder %s29_s27, %s29_s27 }
  0x1b   :  { %p219_p11 = scmp.ne.s32.totalorder %s29_s27, %s218_s8  ;;  %p224_p13 = scmp.lt.s32.totalorder %s218_s8, %s218_s8 }
  0x1d   :  { %p225_p0 = por %p224_p13, %p223_p12 }
  0x1f   :  { %p226_p1 = pnand %p225_p0, %p219_p11 }
  0x21   :  { %229 = shalt.err (!%p226_p1)
}
  0x22   :  { %34 = dma.hbm_to_vmem [thread:$0]  %s334_s1, 512, %s29_s27, [#allocation7], %s259_s22, %s259_s22, %s260_s23  }
  0x23   :  { %252 = dma.done.wait [#allocation4], 256  }
  0x24   :  { %253 = vsyncadd [#allocation4], 4294967040 }
  0x25   :  { %254 = dma.done.wait [#allocation7], 512  }
  0x26   :  { %255 = vsyncadd [#allocation7], 4294966784  ;;  %vm48_vm0 = vcmask 261120   ;;  %v262_v0 = vmov 0.0   ;;  %vm263_vm1 = vmmov 0   ;;  %v54_v1 = vld [vmem:[#allocation6] sm:$0xff] }
  0x27   :  { %49 = vst.msk [vmem:[#allocation2] sm:$0xff] %vm48_vm0, %v262_v0  ;;  %50 = vst.msk [vmem:[#allocation2 + $0x8] sm:$0xff] %vm48_vm0, %v262_v0  ;;  %169 = vmatprep.subr.bf16.mxu0 %v262_v0  ;;  %173 = vmatprep.mubr.msk.bf16.mxu0 %vm263_vm1, %v262_v0  ;;  %v55_v2 = vld [vmem:[#allocation6 + $0x8] sm:$0xff]  ;;  %v56_v4 = vld [vmem:[#allocation6 + $0x10] sm:$0xff]  ;;  %s264_s11 = smov [#allocation8]   ;;  %vm139_vm2 = vcmask 257024  }
  0x28   :  { %v58_v3 = vpack.c.bf16 %v55_v2, %v54_v1  ;;  %v57_v5 = vld [vmem:[#allocation6 + $0x18] sm:$0xff]  ;;  %v51_v9 = vld [vmem:[#allocation3] sm:$0xff]  ;;  %v161_v20 = vld [vmem:[%s335_s2] ss:$0 sm:$0xff]  ;;  %s147_s12 = sshll.u32 %s264_s11, 4  ;;  %s148_s12 = int_to_ptr.vmem [resolvable:$true] %s147_s12 }
  0x29   :  { %v59_v7 = vpack.c.bf16 %v57_v5, %v56_v4  ;;  %v52_v10 = vld [vmem:[#allocation3 + $0x8] sm:$0xff]  ;;  %s230_s13 = scalar_lea.vmem %s148_s12, 128  ;;  %p235_p3 = scmp.lt.s32.totalorder %s148_s12, %s148_s12 }
  0x2a   :  { %v67_v6 = vsel %vm48_vm0, %v58_v3, 0  ;;  %v53_v11 = vpack.c.bf16 %v52_v10, %v51_v9  ;;  %p231_p2 = scmp.ne.s32.totalorder %s148_s12, %s230_s13  ;;  %p236_p4 = scmp.lt.s32.totalorder %s230_s13, %s230_s13 }
  0x2b   :  { %170 = vmatpush3.bf16.xpose.msra.mxu0 %v67_v6  ;;  %v70_v8 = vsel %vm48_vm0, %v59_v7, 0 }
  0x2c   :  { %171 = vmatprep.subr.bf16.mxu0 %v262_v0  ;;  %p237_p5 = por %p236_p4, %p235_p3 }
  0x2e   :  { %v60_v12 = vld [vmem:[#allocation2] sm:$0xff]  ;;  %v61_v14 = vld [vmem:[#allocation2 + $0x8] sm:$0xff]  ;;  %p238_p6 = pnand %p237_p5, %p231_p2 }
  0x33   :  { %172 = vmatpush3.bf16.xpose.msra.mxu0 %v70_v8 }
  0x3a   :  { %174 = vmatmul.mubr.msk.bf16.vlgmr.msra.gmra.mrb[0].mxu0 %vm48_vm0, %v53_v11 }
 0x10d   :  { %v106_v13 = vpop.f32.mrb[0].mxu0 }
 0x10e   :  { %v113_v15 = vadd.f32 %v106_v13, %v60_v12  ;;  %v175_v16 = vpop.f32.mrb[1].mxu0 }
 0x10f   :  { %v109_v17 = vpop.f32.mrb[2].mxu0 }
 0x110   :  { %115 = vst.msk [vmem:[#allocation2] sm:$0xff] %vm48_vm0, %v113_v15  ;;  %v114_v18 = vadd.f32 %v109_v17, %v61_v14  ;;  %v176_v19 = vpop.f32.mrb[3].mxu0 }
 0x112   :  { %116 = vst.msk [vmem:[#allocation2 + $0x8] sm:$0xff] %vm48_vm0, %v114_v18 }
 0x117   :  { %v120_v21 = vld [vmem:[#allocation2] sm:$0xff] }
 0x118   :  { %v129_v22 = vadd.f32 %v161_v20, %v120_v21 }
 0x119   :  { %v121_v23 = vld [vmem:[#allocation2 + $0x8] sm:$0xff] }
 0x11a   :  { %v130_v24 = vadd.f32 %v161_v20, %v121_v23  ;;  %v164_v25 = vpack.c.bf16 %v129_v22, %v129_v22 }
 0x11c   :  { %v165_v26 = vpack.c.bf16 %v130_v24, %v130_v24  ;;  %140 = vst.msk [vmem:[#allocation8] sm:$0xf] %vm139_vm2, %v164_v25 }
 0x11e   :  { %141 = vst.msk [vmem:[#allocation8 + $0x4] sm:$0xf] %vm139_vm2, %v165_v26 }
 0x11f   :  { %241 = shalt.err (!%p238_p6)
}
 0x120   :  { %s242_s15 = scalar_lea.hbm %s336_s3, 128 }
 0x121   :  { %p243_p7 = scmp.ne.s32.totalorder %s336_s3, %s242_s15  ;;  %p246_p8 = scmp.lt.u32.totalorder %s242_s15, %s336_s3 }
 0x123   :  { %p248_p9 = pnand %p246_p8, %p243_p7 }
 0x125   :  { %251 = shalt.err (!%p248_p9)
}
 0x126   :  { %s265_s20 = smov 64   ;;  %s266_s21 = smov 4  }
 0x127   :  { %153 = dma.vmem_to_hbm [thread:$0]  %s148_s12, 128, %s336_s3, [#allocation5], %s265_s20, %s265_s20, %s266_s21  }
 0x128   :  { %256 = dma.done.wait [#allocation5], 128  }
 0x129   :  { %257 = vsyncadd [#allocation5], 4294967168 }
 0x12a   :  { %157 = vsyncpa [#allocation4], 1 }
 0x12b   :  { %158 = vsyncpa [#allocation7], 1 }
 0x12c   :  { %159 = vsyncpa [#allocation5], 1 }

</bundles_post_ra>
